<compile_context>
chip_gen: v7x
topology: tpu7x:2x2x1
jax: 0.10.0
libtpu: 0.0.40
codegen_flags: <defaults>
</compile_context>

<pallas_src>
import functools

import jax
import jax.numpy as jnp
from jax import lax
from jax.experimental import pallas as pl
from jax.experimental.pallas import tpu as pltpu


# Contract the last dim of both operands ("NT" matmul) -> no explicit k.T.
_NT_DIMS = (((1,), (1,)), ((), ()))


def _softmax_exp_dtype():
    """bf16 exp on bf16-capable EUPs (v6e/v7x); f32 on v5e and older."""
    try:
        kind = jax.devices()[0].device_kind.lower()
    except Exception:
        return jnp.float32
    if "tpu" not in kind:
        return jnp.float32
    for old in ("v2", "v3", "v4", "v5"):
        if old in kind:
            return jnp.float32
    return jnp.bfloat16


def _attention_kernel(x_ref, wqkv_ref, wproj_ref, bias_ref, o_ref,
                      qkv_ref, ocat_ref, *, num_heads, head_dim, exp_dtype):
    """One batch element per grid step.

    x_ref    : (N, C)  bf16   (leading batch dim squeezed)
    wqkv_ref : (C, 3C) bf16   resident (softmax scale pre-folded into q cols)
    wproj_ref: (C, C)  bf16   resident
    bias_ref : (1, C)  f32
    o_ref    : (N, C)  out dtype
    qkv_ref  : (N, 3C) f32 scratch   (fused QKV projection result)
    ocat_ref : (N, C)  f32 scratch   (head-concat buffer)
    """
    H, d = num_heads, head_dim
    C = H * d

    x = x_ref[...]                                                  # (N, C) bf16

    # (1) Full-width fused QKV projection: one (N, C) @ (C, 3C) MXU matmul
    #     with full C-deep contraction and 3C-wide output.
    qkv_ref[...] = jnp.dot(x, wqkv_ref[...],
                           preferred_element_type=jnp.float32)      # (N, 3C) f32

    # (2) Per-head attention handled in-body (static unroll; no per-head grid
    #     steps).  Scores / softmax / P@V are inherently d-deep per head.
    for h in range(H):
        lo = h * d
        qh = qkv_ref[:, lo:lo + d].astype(jnp.bfloat16)             # (N, d)
        kh = qkv_ref[:, C + lo:C + lo + d].astype(jnp.bfloat16)     # (N, d)
        vh = qkv_ref[:, 2 * C + lo:2 * C + lo + d].astype(jnp.bfloat16)

        # scores = q @ k^T, contracting d directly (no materialized transpose);
        # the softmax scale was folded into the q weights on the host.
        s = lax.dot_general(qh, kh, _NT_DIMS,
                            preferred_element_type=jnp.float32)     # (N, N) f32

        # Numerically-stable softmax: f32 stats, EUP reciprocal; exp argument
        # in bf16 where the EUP supports it (v6e/v7x).
        m = jnp.max(s, axis=-1, keepdims=True)
        e = jnp.exp((s - m).astype(exp_dtype)).astype(jnp.float32)
        p = e * pl.reciprocal(jnp.sum(e, axis=-1, keepdims=True), approx=True)
        # attn_drop / proj_drop are Dropout(0.0) -> identity in eval mode.

        oh = jnp.dot(p.astype(jnp.bfloat16), vh,
                     preferred_element_type=jnp.float32)            # (N, d) f32

        # Head concat: write head h's output into its column slab (written
        # exactly once per head; no read-modify-write of the full buffer).
        ocat_ref[:, lo:lo + d] = oh

    # (3) ONE full-depth (N, C) @ (C, C) output projection + bias.
    y = jnp.dot(ocat_ref[...].astype(jnp.bfloat16), wproj_ref[...],
                preferred_element_type=jnp.float32)                 # (N, C) f32
    o_ref[...] = (y + bias_ref[...]).astype(o_ref.dtype)


def attention_forward(x, w_qkv, w_proj, b_proj, *, num_heads):
    """Pallas forward of the ViT Attention module.

    x      : (B, N, C)
    w_qkv  : (3C, C)  PyTorch nn.Linear weight (out, in), qkv_bias=False
    w_proj : (C, C)   PyTorch nn.Linear weight (out, in)
    b_proj : (C,)     proj bias
    """
    B, N, C = x.shape
    H = num_heads
    d = C // H
    scale = d ** (-0.5)

    # ---- one-time host-side weight layout prep (outside the kernel) ----
    wqkv_t = jnp.asarray(w_qkv).T.astype(jnp.float32)               # (C, 3C)
    # Fold the softmax scale into the q output features (columns 0..C-1).
    wqkv_t = wqkv_t.at[:, :C].multiply(scale)
    wqkv_bf = wqkv_t.astype(jnp.bfloat16)
    wproj_bf = jnp.asarray(w_proj).T.astype(jnp.bfloat16)           # (C, C)
    bias2d = jnp.asarray(b_proj).reshape(1, C).astype(jnp.float32)
    x_bf = jnp.asarray(x).astype(jnp.bfloat16)

    kernel = functools.partial(_attention_kernel, num_heads=H, head_dim=d,
                               exp_dtype=_softmax_exp_dtype())

    # ---- VMEM budget (realistic per-step working set) ----
    out_itemsize = jnp.dtype(x.dtype).itemsize
    est = (
        2 * (N * C * 2)              # x block (bf16), double-buffered
        + 2 * (N * C * out_itemsize)  # out block, double-buffered
        + 2 * (3 * C * C * 2)        # QKV weights (bf16), default double-buffer
        + 2 * (C * C * 2)            # proj weights (bf16), default double-buffer
        + 2 * (8 * max(C, 128) * 4)  # bias block (padded), double-buffered
        + N * 3 * C * 4              # qkv f32 scratch
        + N * C * 4                  # head-concat f32 scratch
        + 3 * N * N * 4              # live s / e / p f32 temporaries
        + N * C * 4                  # y f32 before cast
    )
    # Note: constant index maps keep the weights resident; pipeline_mode=
    # pl.Buffered(1) would also halve their buffer allocation but is omitted
    # here for lowering portability.
    # 2x headroom for compiler-internal scratch; cap at 56 MiB so v7x's 64 MiB
    # physical VMEM keeps slack (v5e/v6e have 128 MiB and are unaffected).
    vmem_limit = int(min(56 * 1024 * 1024, max(32 * 1024 * 1024, 2 * est)))

    return pl.pallas_call(
        kernel,
        out_shape=jax.ShapeDtypeStruct((B, N, C), x.dtype),
        grid_spec=pltpu.PrefetchScalarGridSpec(
            num_scalar_prefetch=0,
            grid=(B,),
            in_specs=[
                pl.BlockSpec((pl.Squeezed(), N, C), lambda b: (b, 0, 0)),  # x
                pl.BlockSpec((C, 3 * C), lambda b: (0, 0)),   # W_qkv^T (resident)
                pl.BlockSpec((C, C), lambda b: (0, 0)),       # W_proj^T (resident)
                pl.BlockSpec((1, C), lambda b: (0, 0)),       # proj bias
            ],
            out_specs=pl.BlockSpec((pl.Squeezed(), N, C), lambda b: (b, 0, 0)),
            scratch_shapes=[
                pltpu.VMEM((N, 3 * C), jnp.float32),          # fused QKV result
                pltpu.VMEM((N, C), jnp.float32),              # head-concat buffer
            ],
        ),
        compiler_params=pltpu.CompilerParams(
            dimension_semantics=("parallel",),
            vmem_limit_bytes=vmem_limit,
        ),
    )(x_bf, wqkv_bf, wproj_bf, bias2d)


def attention_reference(x, w_qkv, w_proj, b_proj, *, num_heads):
    """Plain-JAX (f32) reference mirroring the PyTorch forward, for validation."""
    B, N, C = x.shape
    H = num_heads
    d = C // H
    scale = d ** (-0.5)

    qkv = x @ w_qkv.T                                               # (B, N, 3C)
    qkv = jnp.transpose(qkv.reshape(B, N, 3, H, d), (2, 0, 3, 1, 4))
    q, k, v = qkv[0], qkv[1], qkv[2]                                # (B, H, N, d)
    attn = jnp.einsum('bhnd,bhmd->bhnm', q, k) * scale
    attn = jax.nn.softmax(attn, axis=-1)
    out = jnp.einsum('bhnm,bhmd->bhnd', attn, v)
    out = jnp.transpose(out, (0, 2, 1, 3)).reshape(B, N, C)
    return out @ w_proj.T + b_proj


if __name__ == "__main__":
    # Small shapes consistent with the module: B=2, N=8 tokens, C=32 dim, 8 heads.
    # (These are far below MXU/tile granularity; they validate correctness only.)
    B, N, C = 2, 8, 32
    num_heads = 8

    key = jax.random.PRNGKey(0)
    kx, kqkv, kproj, kb = jax.random.split(key, 4)

    x = jax.random.normal(kx, (B, N, C), dtype=jnp.float32)
    # PyTorch nn.Linear stores W as (out, in).
    w_qkv = 0.02 * jax.random.normal(kqkv, (3 * C, C), dtype=jnp.float32)
    w_proj = 0.02 * jax.random.normal(kproj, (C, C), dtype=jnp.float32)
    b_proj = 0.02 * jax.random.normal(kb, (C,), dtype=jnp.float32)

    out = attention_forward(x, w_qkv, w_proj, b_proj, num_heads=num_heads)
    out = jax.block_until_ready(out)

    ref = attention_reference(x, w_qkv, w_proj, b_proj, num_heads=num_heads)
    assert out.shape == (B, N, C)
    # bf16 compute + approx reciprocal inside the kernel -> loosened tolerance
    # versus the f32 reference.
    max_err = float(jnp.max(jnp.abs(out - ref)))
    assert jnp.allclose(out, ref, atol=1e-2, rtol=1e-2), (
        f"mismatch vs reference (max abs err = {max_err})")

    print("KERNEL_OK")
</pallas_src>

<mosaic_0001>
module attributes {stable_mosaic.version = 11 : i64} {
  func.func @_attention_kernel(%arg0: i32, %arg1: memref<1x8x32xbf16, #tpu.memory_space<vmem>>, %arg2: memref<32x96xbf16, #tpu.memory_space<vmem>>, %arg3: memref<32x32xbf16, #tpu.memory_space<vmem>>, %arg4: memref<1x32xf32, #tpu.memory_space<vmem>>, %arg5: memref<1x8x32xf32, #tpu.memory_space<vmem>>, %arg6: memref<8x96xf32, #tpu.memory_space<vmem>>, %arg7: memref<8x32xf32, #tpu.memory_space<vmem>>) attributes {dimension_semantics = [#tpu.dimension_semantics<parallel>], iteration_bounds = array<i64: 2>, scalar_prefetch = 0 : i64, scratch_operands = 2 : i64, tpu.core_type = #tpu.core_type<tc>, window_params = [{transform_indices = @transform_0, window_bounds = array<i64: 1, 8, 32>}, {pipeline_mode = #tpu.pipeline_mode<synchronous>, transform_indices = @transform_1, window_bounds = array<i64: 32, 96>}, {pipeline_mode = #tpu.pipeline_mode<synchronous>, transform_indices = @transform_2, window_bounds = array<i64: 32, 32>}, {pipeline_mode = #tpu.pipeline_mode<synchronous>, transform_indices = @transform_3, window_bounds = array<i64: 1, 32>}, {transform_indices = @transform_4, window_bounds = array<i64: 1, 8, 32>}]} {
    %c0 = arith.constant 0 : index
    %c0_0 = arith.constant 0 : index
    %c0_1 = arith.constant 0 : index
    %0 = vector.load %arg1[%c0, %c0_0, %c0_1] : memref<1x8x32xbf16, #tpu.memory_space<vmem>>, vector<1x8x32xbf16>
    %1 = vector.shape_cast %0 : vector<1x8x32xbf16> to vector<8x32xbf16>
    %c0_2 = arith.constant 0 : index
    %c0_3 = arith.constant 0 : index
    %2 = vector.load %arg2[%c0_2, %c0_3] : memref<32x96xbf16, #tpu.memory_space<vmem>>, vector<32x96xbf16>
    %cst = arith.constant dense<0.000000e+00> : vector<8x96xf32>
    %3 = tpu.matmul %1, %2, %cst {dimension_numbers = #tpu.dot_dimension_numbers<[1], [0], [0], [1], [0, 0, 1, 1], [], []>} : vector<8x32xbf16>, vector<32x96xbf16>, vector<8x96xf32> -> vector<8x96xf32>
    %c0_4 = arith.constant 0 : index
    %c0_5 = arith.constant 0 : index
    %4 = vector.load %arg6[%c0_4, %c0_5] : memref<8x96xf32, #tpu.memory_space<vmem>>, vector<8x96xf32>
    tpu.vector_store %arg6[%c0_4, %c0_5], %3 {strides = array<i32>} : memref<8x96xf32, #tpu.memory_space<vmem>>, vector<8x96xf32>,
    %c0_6 = arith.constant 0 : index
    %c0_7 = arith.constant 0 : index
    %5 = vector.load %arg6[%c0_6, %c0_7] : memref<8x96xf32, #tpu.memory_space<vmem>>, vector<8x4xf32>
    %6 = arith.truncf %5 : vector<8x4xf32> to vector<8x4xbf16>
    %c0_8 = arith.constant 0 : index
    %c32 = arith.constant 32 : index
    %7 = vector.load %arg6[%c0_8, %c32] : memref<8x96xf32, #tpu.memory_space<vmem>>, vector<8x4xf32>
    %8 = arith.truncf %7 : vector<8x4xf32> to vector<8x4xbf16>
    %c0_9 = arith.constant 0 : index
    %c64 = arith.constant 64 : index
    %9 = vector.load %arg6[%c0_9, %c64] : memref<8x96xf32, #tpu.memory_space<vmem>>, vector<8x4xf32>
    %10 = arith.truncf %9 : vector<8x4xf32> to vector<8x4xbf16>
    %cst_10 = arith.constant dense<0.000000e+00> : vector<8x8xf32>
    %11 = tpu.matmul %6, %8, %cst_10 {dimension_numbers = #tpu.dot_dimension_numbers<[1], [1], [0], [0], [0, 0, 1, 0], [], []>} : vector<8x4xbf16>, vector<8x4xbf16>, vector<8x8xf32> -> vector<8x8xf32>
    %cst_11 = arith.constant dense<0xFF800000> : vector<8xf32>
    %12 = vector.multi_reduction <maximumf>, %11, %cst_11 [1] : vector<8x8xf32> to vector<8xf32>
    %13 = vector.shape_cast %12 : vector<8xf32> to vector<8x1xf32>
    %14 = vector.broadcast %13 : vector<8x1xf32> to vector<8x8xf32>
    %15 = arith.subf %11, %14 : vector<8x8xf32>
    %16 = math.exp %15 : vector<8x8xf32>
    %cst_12 = arith.constant dense<0.000000e+00> : vector<8xf32>
    %17 = vector.multi_reduction <add>, %16, %cst_12 [1] : vector<8x8xf32> to vector<8xf32>
    %18 = vector.shape_cast %17 : vector<8xf32> to vector<8x1xf32>
    %19 = tpu.reciprocal %18 {approx = true} : vector<8x1xf32> -> vector<8x1xf32>
    %20 = vector.broadcast %19 : vector<8x1xf32> to vector<8x8xf32>
    %21 = arith.mulf %16, %20 : vector<8x8xf32>
    %22 = arith.truncf %21 : vector<8x8xf32> to vector<8x8xbf16>
    %cst_13 = arith.constant dense<0.000000e+00> : vector<8x4xf32>
    %23 = tpu.matmul %22, %10, %cst_13 {dimension_numbers = #tpu.dot_dimension_numbers<[1], [0], [0], [1], [0, 0, 1, 1], [], []>} : vector<8x8xbf16>, vector<8x4xbf16>, vector<8x4xf32> -> vector<8x4xf32>
    %c0_14 = arith.constant 0 : index
    %c0_15 = arith.constant 0 : index
    %24 = vector.load %arg7[%c0_14, %c0_15] : memref<8x32xf32, #tpu.memory_space<vmem>>, vector<8x4xf32>
    tpu.vector_store %arg7[%c0_14, %c0_15], %23 {strides = array<i32>} : memref<8x32xf32, #tpu.memory_space<vmem>>, vector<8x4xf32>,
    %c0_16 = arith.constant 0 : index
    %c4 = arith.constant 4 : index
    %25 = vector.load %arg6[%c0_16, %c4] : memref<8x96xf32, #tpu.memory_space<vmem>>, vector<8x4xf32>
    %26 = arith.truncf %25 : vector<8x4xf32> to vector<8x4xbf16>
    %c0_17 = arith.constant 0 : index
    %c36 = arith.constant 36 : index
    %27 = vector.load %arg6[%c0_17, %c36] : memref<8x96xf32, #tpu.memory_space<vmem>>, vector<8x4xf32>
    %28 = arith.truncf %27 : vector<8x4xf32> to vector<8x4xbf16>
    %c0_18 = arith.constant 0 : index
    %c68 = arith.constant 68 : index
    %29 = vector.load %arg6[%c0_18, %c68] : memref<8x96xf32, #tpu.memory_space<vmem>>, vector<8x4xf32>
    %30 = arith.truncf %29 : vector<8x4xf32> to vector<8x4xbf16>
    %cst_19 = arith.constant dense<0.000000e+00> : vector<8x8xf32>
    %31 = tpu.matmul %26, %28, %cst_19 {dimension_numbers = #tpu.dot_dimension_numbers<[1], [1], [0], [0], [0, 0, 1, 0], [], []>} : vector<8x4xbf16>, vector<8x4xbf16>, vector<8x8xf32> -> vector<8x8xf32>
    %cst_20 = arith.constant dense<0xFF800000> : vector<8xf32>
    %32 = vector.multi_reduction <maximumf>, %31, %cst_20 [1] : vector<8x8xf32> to vector<8xf32>
    %33 = vector.shape_cast %32 : vector<8xf32> to vector<8x1xf32>
    %34 = vector.broadcast %33 : vector<8x1xf32> to vector<8x8xf32>
    %35 = arith.subf %31, %34 : vector<8x8xf32>
    %36 = math.exp %35 : vector<8x8xf32>
    %cst_21 = arith.constant dense<0.000000e+00> : vector<8xf32>
    %37 = vector.multi_reduction <add>, %36, %cst_21 [1] : vector<8x8xf32> to vector<8xf32>
    %38 = vector.shape_cast %37 : vector<8xf32> to vector<8x1xf32>
    %39 = tpu.reciprocal %38 {approx = true} : vector<8x1xf32> -> vector<8x1xf32>
    %40 = vector.broadcast %39 : vector<8x1xf32> to vector<8x8xf32>
    %41 = arith.mulf %36, %40 : vector<8x8xf32>
    %42 = arith.truncf %41 : vector<8x8xf32> to vector<8x8xbf16>
    %cst_22 = arith.constant dense<0.000000e+00> : vector<8x4xf32>
    %43 = tpu.matmul %42, %30, %cst_22 {dimension_numbers = #tpu.dot_dimension_numbers<[1], [0], [0], [1], [0, 0, 1, 1], [], []>} : vector<8x8xbf16>, vector<8x4xbf16>, vector<8x4xf32> -> vector<8x4xf32>
    %c0_23 = arith.constant 0 : index
    %c4_24 = arith.constant 4 : index
    %44 = vector.load %arg7[%c0_23, %c4_24] : memref<8x32xf32, #tpu.memory_space<vmem>>, vector<8x4xf32>
    tpu.vector_store %arg7[%c0_23, %c4_24], %43 {strides = array<i32>} : memref<8x32xf32, #tpu.memory_space<vmem>>, vector<8x4xf32>,
    %c0_25 = arith.constant 0 : index
    %c8 = arith.constant 8 : index
    %45 = vector.load %arg6[%c0_25, %c8] : memref<8x96xf32, #tpu.memory_space<vmem>>, vector<8x4xf32>
    %46 = arith.truncf %45 : vector<8x4xf32> to vector<8x4xbf16>
    %c0_26 = arith.constant 0 : index
    %c40 = arith.constant 40 : index
    %47 = vector.load %arg6[%c0_26, %c40] : memref<8x96xf32, #tpu.memory_space<vmem>>, vector<8x4xf32>
    %48 = arith.truncf %47 : vector<8x4xf32> to vector<8x4xbf16>
    %c0_27 = arith.constant 0 : index
    %c72 = arith.constant 72 : index
    %49 = vector.load %arg6[%c0_27, %c72] : memref<8x96xf32, #tpu.memory_space<vmem>>, vector<8x4xf32>
    %50 = arith.truncf %49 : vector<8x4xf32> to vector<8x4xbf16>
    %cst_28 = arith.constant dense<0.000000e+00> : vector<8x8xf32>
    %51 = tpu.matmul %46, %48, %cst_28 {dimension_numbers = #tpu.dot_dimension_numbers<[1], [1], [0], [0], [0, 0, 1, 0], [], []>} : vector<8x4xbf16>, vector<8x4xbf16>, vector<8x8xf32> -> vector<8x8xf32>
    %cst_29 = arith.constant dense<0xFF800000> : vector<8xf32>
    %52 = vector.multi_reduction <maximumf>, %51, %cst_29 [1] : vector<8x8xf32> to vector<8xf32>
    %53 = vector.shape_cast %52 : vector<8xf32> to vector<8x1xf32>
    %54 = vector.broadcast %53 : vector<8x1xf32> to vector<8x8xf32>
    %55 = arith.subf %51, %54 : vector<8x8xf32>
    %56 = math.exp %55 : vector<8x8xf32>
    %cst_30 = arith.constant dense<0.000000e+00> : vector<8xf32>
    %57 = vector.multi_reduction <add>, %56, %cst_30 [1] : vector<8x8xf32> to vector<8xf32>
    %58 = vector.shape_cast %57 : vector<8xf32> to vector<8x1xf32>
    %59 = tpu.reciprocal %58 {approx = true} : vector<8x1xf32> -> vector<8x1xf32>
    %60 = vector.broadcast %59 : vector<8x1xf32> to vector<8x8xf32>
    %61 = arith.mulf %56, %60 : vector<8x8xf32>
    %62 = arith.truncf %61 : vector<8x8xf32> to vector<8x8xbf16>
    %cst_31 = arith.constant dense<0.000000e+00> : vector<8x4xf32>
    %63 = tpu.matmul %62, %50, %cst_31 {dimension_numbers = #tpu.dot_dimension_numbers<[1], [0], [0], [1], [0, 0, 1, 1], [], []>} : vector<8x8xbf16>, vector<8x4xbf16>, vector<8x4xf32> -> vector<8x4xf32>
    %c0_32 = arith.constant 0 : index
    %c8_33 = arith.constant 8 : index
    %64 = vector.load %arg7[%c0_32, %c8_33] : memref<8x32xf32, #tpu.memory_space<vmem>>, vector<8x4xf32>
    tpu.vector_store %arg7[%c0_32, %c8_33], %63 {strides = array<i32>} : memref<8x32xf32, #tpu.memory_space<vmem>>, vector<8x4xf32>,
    %c0_34 = arith.constant 0 : index
    %c12 = arith.constant 12 : index
    %65 = vector.load %arg6[%c0_34, %c12] : memref<8x96xf32, #tpu.memory_space<vmem>>, vector<8x4xf32>
    %66 = arith.truncf %65 : vector<8x4xf32> to vector<8x4xbf16>
    %c0_35 = arith.constant 0 : index
    %c44 = arith.constant 44 : index
    %67 = vector.load %arg6[%c0_35, %c44] : memref<8x96xf32, #tpu.memory_space<vmem>>, vector<8x4xf32>
    %68 = arith.truncf %67 : vector<8x4xf32> to vector<8x4xbf16>
    %c0_36 = arith.constant 0 : index
    %c76 = arith.constant 76 : index
    %69 = vector.load %arg6[%c0_36, %c76] : memref<8x96xf32, #tpu.memory_space<vmem>>, vector<8x4xf32>
    %70 = arith.truncf %69 : vector<8x4xf32> to vector<8x4xbf16>
    %cst_37 = arith.constant dense<0.000000e+00> : vector<8x8xf32>
    %71 = tpu.matmul %66, %68, %cst_37 {dimension_numbers = #tpu.dot_dimension_numbers<[1], [1], [0], [0], [0, 0, 1, 0], [], []>} : vector<8x4xbf16>, vector<8x4xbf16>, vector<8x8xf32> -> vector<8x8xf32>
    %cst_38 = arith.constant dense<0xFF800000> : vector<8xf32>
    %72 = vector.multi_reduction <maximumf>, %71, %cst_38 [1] : vector<8x8xf32> to vector<8xf32>
    %73 = vector.shape_cast %72 : vector<8xf32> to vector<8x1xf32>
    %74 = vector.broadcast %73 : vector<8x1xf32> to vector<8x8xf32>
    %75 = arith.subf %71, %74 : vector<8x8xf32>
    %76 = math.exp %75 : vector<8x8xf32>
    %cst_39 = arith.constant dense<0.000000e+00> : vector<8xf32>
    %77 = vector.multi_reduction <add>, %76, %cst_39 [1] : vector<8x8xf32> to vector<8xf32>
    %78 = vector.shape_cast %77 : vector<8xf32> to vector<8x1xf32>
    %79 = tpu.reciprocal %78 {approx = true} : vector<8x1xf32> -> vector<8x1xf32>
    %80 = vector.broadcast %79 : vector<8x1xf32> to vector<8x8xf32>
    %81 = arith.mulf %76, %80 : vector<8x8xf32>
    %82 = arith.truncf %81 : vector<8x8xf32> to vector<8x8xbf16>
    %cst_40 = arith.constant dense<0.000000e+00> : vector<8x4xf32>
    %83 = tpu.matmul %82, %70, %cst_40 {dimension_numbers = #tpu.dot_dimension_numbers<[1], [0], [0], [1], [0, 0, 1, 1], [], []>} : vector<8x8xbf16>, vector<8x4xbf16>, vector<8x4xf32> -> vector<8x4xf32>
    %c0_41 = arith.constant 0 : index
    %c12_42 = arith.constant 12 : index
    %84 = vector.load %arg7[%c0_41, %c12_42] : memref<8x32xf32, #tpu.memory_space<vmem>>, vector<8x4xf32>
    tpu.vector_store %arg7[%c0_41, %c12_42], %83 {strides = array<i32>} : memref<8x32xf32, #tpu.memory_space<vmem>>, vector<8x4xf32>,
    %c0_43 = arith.constant 0 : index
    %c16 = arith.constant 16 : index
    %85 = vector.load %arg6[%c0_43, %c16] : memref<8x96xf32, #tpu.memory_space<vmem>>, vector<8x4xf32>
    %86 = arith.truncf %85 : vector<8x4xf32> to vector<8x4xbf16>
    %c0_44 = arith.constant 0 : index
    %c48 = arith.constant 48 : index
    %87 = vector.load %arg6[%c0_44, %c48] : memref<8x96xf32, #tpu.memory_space<vmem>>, vector<8x4xf32>
    %88 = arith.truncf %87 : vector<8x4xf32> to vector<8x4xbf16>
    %c0_45 = arith.constant 0 : index
    %c80 = arith.constant 80 : index
    %89 = vector.load %arg6[%c0_45, %c80] : memref<8x96xf32, #tpu.memory_space<vmem>>, vector<8x4xf32>
    %90 = arith.truncf %89 : vector<8x4xf32> to vector<8x4xbf16>
    %cst_46 = arith.constant dense<0.000000e+00> : vector<8x8xf32>
    %91 = tpu.matmul %86, %88, %cst_46 {dimension_numbers = #tpu.dot_dimension_numbers<[1], [1], [0], [0], [0, 0, 1, 0], [], []>} : vector<8x4xbf16>, vector<8x4xbf16>, vector<8x8xf32> -> vector<8x8xf32>
    %cst_47 = arith.constant dense<0xFF800000> : vector<8xf32>
    %92 = vector.multi_reduction <maximumf>, %91, %cst_47 [1] : vector<8x8xf32> to vector<8xf32>
    %93 = vector.shape_cast %92 : vector<8xf32> to vector<8x1xf32>
    %94 = vector.broadcast %93 : vector<8x1xf32> to vector<8x8xf32>
    %95 = arith.subf %91, %94 : vector<8x8xf32>
    %96 = math.exp %95 : vector<8x8xf32>
    %cst_48 = arith.constant dense<0.000000e+00> : vector<8xf32>
    %97 = vector.multi_reduction <add>, %96, %cst_48 [1] : vector<8x8xf32> to vector<8xf32>
    %98 = vector.shape_cast %97 : vector<8xf32> to vector<8x1xf32>
    %99 = tpu.reciprocal %98 {approx = true} : vector<8x1xf32> -> vector<8x1xf32>
    %100 = vector.broadcast %99 : vector<8x1xf32> to vector<8x8xf32>
    %101 = arith.mulf %96, %100 : vector<8x8xf32>
    %102 = arith.truncf %101 : vector<8x8xf32> to vector<8x8xbf16>
    %cst_49 = arith.constant dense<0.000000e+00> : vector<8x4xf32>
    %103 = tpu.matmul %102, %90, %cst_49 {dimension_numbers = #tpu.dot_dimension_numbers<[1], [0], [0], [1], [0, 0, 1, 1], [], []>} : vector<8x8xbf16>, vector<8x4xbf16>, vector<8x4xf32> -> vector<8x4xf32>
    %c0_50 = arith.constant 0 : index
    %c16_51 = arith.constant 16 : index
    %104 = vector.load %arg7[%c0_50, %c16_51] : memref<8x32xf32, #tpu.memory_space<vmem>>, vector<8x4xf32>
    tpu.vector_store %arg7[%c0_50, %c16_51], %103 {strides = array<i32>} : memref<8x32xf32, #tpu.memory_space<vmem>>, vector<8x4xf32>,
    %c0_52 = arith.constant 0 : index
    %c20 = arith.constant 20 : index
    %105 = vector.load %arg6[%c0_52, %c20] : memref<8x96xf32, #tpu.memory_space<vmem>>, vector<8x4xf32>
    %106 = arith.truncf %105 : vector<8x4xf32> to vector<8x4xbf16>
    %c0_53 = arith.constant 0 : index
    %c52 = arith.constant 52 : index
    %107 = vector.load %arg6[%c0_53, %c52] : memref<8x96xf32, #tpu.memory_space<vmem>>, vector<8x4xf32>
    %108 = arith.truncf %107 : vector<8x4xf32> to vector<8x4xbf16>
    %c0_54 = arith.constant 0 : index
    %c84 = arith.constant 84 : index
    %109 = vector.load %arg6[%c0_54, %c84] : memref<8x96xf32, #tpu.memory_space<vmem>>, vector<8x4xf32>
    %110 = arith.truncf %109 : vector<8x4xf32> to vector<8x4xbf16>
    %cst_55 = arith.constant dense<0.000000e+00> : vector<8x8xf32>
    %111 = tpu.matmul %106, %108, %cst_55 {dimension_numbers = #tpu.dot_dimension_numbers<[1], [1], [0], [0], [0, 0, 1, 0], [], []>} : vector<8x4xbf16>, vector<8x4xbf16>, vector<8x8xf32> -> vector<8x8xf32>
    %cst_56 = arith.constant dense<0xFF800000> : vector<8xf32>
    %112 = vector.multi_reduction <maximumf>, %111, %cst_56 [1] : vector<8x8xf32> to vector<8xf32>
    %113 = vector.shape_cast %112 : vector<8xf32> to vector<8x1xf32>
    %114 = vector.broadcast %113 : vector<8x1xf32> to vector<8x8xf32>
    %115 = arith.subf %111, %114 : vector<8x8xf32>
    %116 = math.exp %115 : vector<8x8xf32>
    %cst_57 = arith.constant dense<0.000000e+00> : vector<8xf32>
    %117 = vector.multi_reduction <add>, %116, %cst_57 [1] : vector<8x8xf32> to vector<8xf32>
    %118 = vector.shape_cast %117 : vector<8xf32> to vector<8x1xf32>
    %119 = tpu.reciprocal %118 {approx = true} : vector<8x1xf32> -> vector<8x1xf32>
    %120 = vector.broadcast %119 : vector<8x1xf32> to vector<8x8xf32>
    %121 = arith.mulf %116, %120 : vector<8x8xf32>
    %122 = arith.truncf %121 : vector<8x8xf32> to vector<8x8xbf16>
    %cst_58 = arith.constant dense<0.000000e+00> : vector<8x4xf32>
    %123 = tpu.matmul %122, %110, %cst_58 {dimension_numbers = #tpu.dot_dimension_numbers<[1], [0], [0], [1], [0, 0, 1, 1], [], []>} : vector<8x8xbf16>, vector<8x4xbf16>, vector<8x4xf32> -> vector<8x4xf32>
    %c0_59 = arith.constant 0 : index
    %c20_60 = arith.constant 20 : index
    %124 = vector.load %arg7[%c0_59, %c20_60] : memref<8x32xf32, #tpu.memory_space<vmem>>, vector<8x4xf32>
    tpu.vector_store %arg7[%c0_59, %c20_60], %123 {strides = array<i32>} : memref<8x32xf32, #tpu.memory_space<vmem>>, vector<8x4xf32>,
    %c0_61 = arith.constant 0 : index
    %c24 = arith.constant 24 : index
    %125 = vector.load %arg6[%c0_61, %c24] : memref<8x96xf32, #tpu.memory_space<vmem>>, vector<8x4xf32>
    %126 = arith.truncf %125 : vector<8x4xf32> to vector<8x4xbf16>
    %c0_62 = arith.constant 0 : index
    %c56 = arith.constant 56 : index
    %127 = vector.load %arg6[%c0_62, %c56] : memref<8x96xf32, #tpu.memory_space<vmem>>, vector<8x4xf32>
    %128 = arith.truncf %127 : vector<8x4xf32> to vector<8x4xbf16>
    %c0_63 = arith.constant 0 : index
    %c88 = arith.constant 88 : index
    %129 = vector.load %arg6[%c0_63, %c88] : memref<8x96xf32, #tpu.memory_space<vmem>>, vector<8x4xf32>
    %130 = arith.truncf %129 : vector<8x4xf32> to vector<8x4xbf16>
    %cst_64 = arith.constant dense<0.000000e+00> : vector<8x8xf32>
    %131 = tpu.matmul %126, %128, %cst_64 {dimension_numbers = #tpu.dot_dimension_numbers<[1], [1], [0], [0], [0, 0, 1, 0], [], []>} : vector<8x4xbf16>, vector<8x4xbf16>, vector<8x8xf32> -> vector<8x8xf32>
    %cst_65 = arith.constant dense<0xFF800000> : vector<8xf32>
    %132 = vector.multi_reduction <maximumf>, %131, %cst_65 [1] : vector<8x8xf32> to vector<8xf32>
    %133 = vector.shape_cast %132 : vector<8xf32> to vector<8x1xf32>
    %134 = vector.broadcast %133 : vector<8x1xf32> to vector<8x8xf32>
    %135 = arith.subf %131, %134 : vector<8x8xf32>
    %136 = math.exp %135 : vector<8x8xf32>
    %cst_66 = arith.constant dense<0.000000e+00> : vector<8xf32>
    %137 = vector.multi_reduction <add>, %136, %cst_66 [1] : vector<8x8xf32> to vector<8xf32>
    %138 = vector.shape_cast %137 : vector<8xf32> to vector<8x1xf32>
    %139 = tpu.reciprocal %138 {approx = true} : vector<8x1xf32> -> vector<8x1xf32>
    %140 = vector.broadcast %139 : vector<8x1xf32> to vector<8x8xf32>
    %141 = arith.mulf %136, %140 : vector<8x8xf32>
    %142 = arith.truncf %141 : vector<8x8xf32> to vector<8x8xbf16>
    %cst_67 = arith.constant dense<0.000000e+00> : vector<8x4xf32>
    %143 = tpu.matmul %142, %130, %cst_67 {dimension_numbers = #tpu.dot_dimension_numbers<[1], [0], [0], [1], [0, 0, 1, 1], [], []>} : vector<8x8xbf16>, vector<8x4xbf16>, vector<8x4xf32> -> vector<8x4xf32>
    %c0_68 = arith.constant 0 : index
    %c24_69 = arith.constant 24 : index
    %144 = vector.load %arg7[%c0_68, %c24_69] : memref<8x32xf32, #tpu.memory_space<vmem>>, vector<8x4xf32>
    tpu.vector_store %arg7[%c0_68, %c24_69], %143 {strides = array<i32>} : memref<8x32xf32, #tpu.memory_space<vmem>>, vector<8x4xf32>,
    %c0_70 = arith.constant 0 : index
    %c28 = arith.constant 28 : index
    %145 = vector.load %arg6[%c0_70, %c28] : memref<8x96xf32, #tpu.memory_space<vmem>>, vector<8x4xf32>
    %146 = arith.truncf %145 : vector<8x4xf32> to vector<8x4xbf16>
    %c0_71 = arith.constant 0 : index
    %c60 = arith.constant 60 : index
    %147 = vector.load %arg6[%c0_71, %c60] : memref<8x96xf32, #tpu.memory_space<vmem>>, vector<8x4xf32>
    %148 = arith.truncf %147 : vector<8x4xf32> to vector<8x4xbf16>
    %c0_72 = arith.constant 0 : index
    %c92 = arith.constant 92 : index
    %149 = vector.load %arg6[%c0_72, %c92] : memref<8x96xf32, #tpu.memory_space<vmem>>, vector<8x4xf32>
    %150 = arith.truncf %149 : vector<8x4xf32> to vector<8x4xbf16>
    %cst_73 = arith.constant dense<0.000000e+00> : vector<8x8xf32>
    %151 = tpu.matmul %146, %148, %cst_73 {dimension_numbers = #tpu.dot_dimension_numbers<[1], [1], [0], [0], [0, 0, 1, 0], [], []>} : vector<8x4xbf16>, vector<8x4xbf16>, vector<8x8xf32> -> vector<8x8xf32>
    %cst_74 = arith.constant dense<0xFF800000> : vector<8xf32>
    %152 = vector.multi_reduction <maximumf>, %151, %cst_74 [1] : vector<8x8xf32> to vector<8xf32>
    %153 = vector.shape_cast %152 : vector<8xf32> to vector<8x1xf32>
    %154 = vector.broadcast %153 : vector<8x1xf32> to vector<8x8xf32>
    %155 = arith.subf %151, %154 : vector<8x8xf32>
    %156 = math.exp %155 : vector<8x8xf32>
    %cst_75 = arith.constant dense<0.000000e+00> : vector<8xf32>
    %157 = vector.multi_reduction <add>, %156, %cst_75 [1] : vector<8x8xf32> to vector<8xf32>
    %158 = vector.shape_cast %157 : vector<8xf32> to vector<8x1xf32>
    %159 = tpu.reciprocal %158 {approx = true} : vector<8x1xf32> -> vector<8x1xf32>
    %160 = vector.broadcast %159 : vector<8x1xf32> to vector<8x8xf32>
    %161 = arith.mulf %156, %160 : vector<8x8xf32>
    %162 = arith.truncf %161 : vector<8x8xf32> to vector<8x8xbf16>
    %cst_76 = arith.constant dense<0.000000e+00> : vector<8x4xf32>
    %163 = tpu.matmul %162, %150, %cst_76 {dimension_numbers = #tpu.dot_dimension_numbers<[1], [0], [0], [1], [0, 0, 1, 1], [], []>} : vector<8x8xbf16>, vector<8x4xbf16>, vector<8x4xf32> -> vector<8x4xf32>
    %c0_77 = arith.constant 0 : index
    %c28_78 = arith.constant 28 : index
    %164 = vector.load %arg7[%c0_77, %c28_78] : memref<8x32xf32, #tpu.memory_space<vmem>>, vector<8x4xf32>
    tpu.vector_store %arg7[%c0_77, %c28_78], %163 {strides = array<i32>} : memref<8x32xf32, #tpu.memory_space<vmem>>, vector<8x4xf32>,
    %c0_79 = arith.constant 0 : index
    %c0_80 = arith.constant 0 : index
    %165 = vector.load %arg7[%c0_79, %c0_80] : memref<8x32xf32, #tpu.memory_space<vmem>>, vector<8x32xf32>
    %166 = arith.truncf %165 : vector<8x32xf32> to vector<8x32xbf16>
    %c0_81 = arith.constant 0 : index
    %c0_82 = arith.constant 0 : index
    %167 = vector.load %arg3[%c0_81, %c0_82] : memref<32x32xbf16, #tpu.memory_space<vmem>>, vector<32x32xbf16>
    %cst_83 = arith.constant dense<0.000000e+00> : vector<8x32xf32>
    %168 = tpu.matmul %166, %167, %cst_83 {dimension_numbers = #tpu.dot_dimension_numbers<[1], [0], [0], [1], [0, 0, 1, 1], [], []>} : vector<8x32xbf16>, vector<32x32xbf16>, vector<8x32xf32> -> vector<8x32xf32>
    %c0_84 = arith.constant 0 : index
    %c0_85 = arith.constant 0 : index
    %169 = vector.load %arg4[%c0_84, %c0_85] : memref<1x32xf32, #tpu.memory_space<vmem>>, vector<1x32xf32>
    %170 = vector.broadcast %169 : vector<1x32xf32> to vector<8x32xf32>
    %171 = arith.addf %168, %170 : vector<8x32xf32>
    %c0_86 = arith.constant 0 : index
    %c0_87 = arith.constant 0 : index
    %c0_88 = arith.constant 0 : index
    %172 = vector.load %arg5[%c0_86, %c0_87, %c0_88] : memref<1x8x32xf32, #tpu.memory_space<vmem>>, vector<1x8x32xf32>
    %173 = vector.shape_cast %172 : vector<1x8x32xf32> to vector<8x32xf32>
    %174 = vector.shape_cast %171 : vector<8x32xf32> to vector<1x8x32xf32>
    tpu.vector_store %arg5[%c0_86, %c0_87, %c0_88], %174 {strides = array<i32>} : memref<1x8x32xf32, #tpu.memory_space<vmem>>, vector<1x8x32xf32>,
    return
  }
  func.func @transform_0(%arg0: i32) -> (i32, i32, i32) {
    %c0_i32 = arith.constant 0 : i32
    %c0_i32_0 = arith.constant 0 : i32
    %c0_i32_1 = arith.constant 0 : i32
    return %arg0, %c0_i32, %c0_i32_0 : i32, i32, i32
  }
  func.func @transform_1(%arg0: i32) -> (i32, i32) {
    %c0_i32 = arith.constant 0 : i32
    %c0_i32_0 = arith.constant 0 : i32
    %c0_i32_1 = arith.constant 0 : i32
    return %c0_i32, %c0_i32_0 : i32, i32
  }
  func.func @transform_2(%arg0: i32) -> (i32, i32) {
    %c0_i32 = arith.constant 0 : i32
    %c0_i32_0 = arith.constant 0 : i32
    %c0_i32_1 = arith.constant 0 : i32
    return %c0_i32, %c0_i32_0 : i32, i32
  }
  func.func @transform_3(%arg0: i32) -> (i32, i32) {
    %c0_i32 = arith.constant 0 : i32
    %c0_i32_0 = arith.constant 0 : i32
    %c0_i32_1 = arith.constant 0 : i32
    return %c0_i32, %c0_i32_0 : i32, i32
  }
  func.func @transform_4(%arg0: i32) -> (i32, i32, i32) {
    %c0_i32 = arith.constant 0 : i32
    %c0_i32_0 = arith.constant 0 : i32
    %c0_i32_1 = arith.constant 0 : i32
    return %arg0, %c0_i32, %c0_i32_0 : i32, i32, i32
  }
}

</mosaic_0001>

<bundles_post_ra>
// kernel: tpu_custom_call.1
= control target key start
LH: loop header
LB: loop body
LE: loop exit
PB: predicated region body
PF: predicated region fallthrough
CT: control target
= control target key end

     0   :  { %9 = vsyncpa [#allocation5], 0  ;;  %s2380_s0 = inlined_call_operand.hbm [shape: bf16[2,8,32], index: 0, kind: input, shape index: {}]   ;;  %s2381_s1 = inlined_call_operand.hbm [shape: bf16[32,96], index: 1, kind: input, shape index: {}]   ;;  %s2382_s2 = inlined_call_operand.hbm [shape: bf16[32,32], index: 2, kind: input, shape index: {}]   ;;  %s2383_s3 = inlined_call_operand.vmem [shape: f32[1,32], index: 3, kind: input, shape index: {}]   ;;  %s2384_s4 = inlined_call_operand.hbm [shape: f32[2,8,32], index: 4, kind: output, shape index: {}]  }
   0x1   :  { %11 = vsyncpa [#allocation5 + $0x1], 0 }
   0x2   :  { %12 = vsyncpa [#allocation8], 0 }
   0x3   :  { %13 = vsyncpa [#allocation6], 0 }
   0x4   :  { %15 = vsyncpa [#allocation6 + $0x1], 0  ;;  %s1973_s15 = smov 0   ;;  %s1975_s16 = smov 0  }
   0x5   :  { %s1977_s17 = smov 0   ;;  %s1979_s18 = smov 0  }
   0x6 LB: > { %s1994_s19 = sadd.s32 4294967295, %s1908_s18   ;;  %s1426_s20 = sadd.s32 4294967294, %s1908_s18   ;;  %s1908_s18 = sphi %s1979_s18, %s2404_s18   ;;  %s1904_s17 = sphi %s1977_s17, %s2403_s17   ;;  %s1900_s16 = sphi %s1975_s16, %s2402_s16   ;;  %s1896_s15 = sphi %s1973_s15, %s2401_s15  }
   0x7   : > { %p41_p0 = scmp.ne.s32.totalorder %s1900_s16, %s1896_s15  ;;  %p2385_p1 = scmp.eq.s32.totalorder %s1994_s19, 0 }
   0x8   : > { %p134_p3 = scmp.eq.s32.totalorder %s1426_s20, 1  ;;  %p1427_p5 = scmp.ge.s32.totalorder %s1908_s18, 1 }
   0x9   : > { %p2003_p4 = por %p2385_p1, %p41_p0  ;;  %p141_p7 = scmp.lt.s32.totalorder %s1908_s18, 3 }
   0xa   : > { %p2008_p6 = por %p134_p3, %p41_p0  ;;  %s1910_s24 = smov [#allocation7]  }
   0xb   : > { %s2388_s21 = scalar_select %p2003_p4, 1, 0 }
   0xc   : > { %s2389_s22 = scalar_select %p2008_p6, 1, 0 }
   0xd   : > { %p2013_p8 = pnand %p1427_p5, %p141_p7  ;;  %s153_s25 = sshll.u32 %s1910_s24, 4  ;;  %s2017_s25 = int_to_ptr.vmem [resolvable:$true] %s153_s25 }
   0xe   : > { %s1911_s27 = smov [#allocation9]   ;;  %s1752_s5 = scalar_lea.hbm %s2381_s1, 256 }
   0xf   : > { %p1627_p9 = pneg %p2013_p8  ;;  %s166_s28 = sshll.u32 %s1911_s27, 4  ;;  %s2028_s28 = int_to_ptr.vmem [resolvable:$true] %s166_s28 }
  0x10   : > { %p1753_p12 = scmp.ne.s32.totalorder %s2381_s1, %s1752_s5  ;;  %p1759_p5 = scmp.lt.u32.totalorder %s1752_s5, %s2381_s1 }
  0x11   : > { %p2024_p11 = pnand %p1627_p9, %p2385_p1 }
  0x13   : > { %p1754_p13 = pneg %p2024_p11 }
  0x15   : > { %p1755_p0 = pnand %p1754_p13, %p1753_p12 }
  0x17   : > { %p1756_p3 = pneg %p1755_p0 }
  0x19   : > { %p1761_p7 = pnand %p1759_p5, %p1756_p3 }
  0x1b   : > { %1764 = shalt.err (!%p1761_p7)
}
  0x1c   : > { %s1765_s10 = scalar_lea.vmem %s2017_s25, 256  ;;  %p1773_p2 = scmp.lt.s32.totalorder %s2017_s25, %s2017_s25 }
  0x1d   : > { %p1766_p9 = scmp.ne.s32.totalorder %s2017_s25, %s1765_s10  ;;  %p1774_p12 = scmp.lt.s32.totalorder %s1765_s10, %s1765_s10 }
  0x1f   : > { %p1768_p10 = pnand %p1766_p9, %p1754_p13  ;;  %p1775_p0 = por %p1774_p12, %p1773_p2 }
  0x21   : > { %p1769_p1 = pneg %p1768_p10 }
  0x23   : > { %p1776_p6 = pnand %p1775_p0, %p1769_p1 }
  0x25   : > { %1779 = shalt.err (!%p1776_p6)
}
  0x26   : > { %s1912_s11 = smov 64   ;;  %s1913_s12 = smov 4  }
  0x27   : > { %1630 = dma.hbm_to_vmem [thread:$0]  (!%p2024_p11), %s2381_s1, 256, %s2017_s25, [#allocation8], %s1912_s11, %s1912_s11, %s1913_s12  }
  0x28   : > { %s1780_s27 = scalar_lea.hbm %s2382_s2, 256 }
  0x29   : > { %p1781_p2 = scmp.ne.s32.totalorder %s2382_s2, %s1780_s27  ;;  %p1787_p10 = scmp.lt.u32.totalorder %s1780_s27, %s2382_s2 }
  0x2b   : > { %p1783_p1 = pnand %p1781_p2, %p1754_p13 }
  0x2d   : > { %p1784_p6 = pneg %p1783_p1 }
  0x2f   : > { %p1789_p3 = pnand %p1787_p10, %p1784_p6 }
  0x31   : > { %1792 = shalt.err (!%p1789_p3)
}
  0x32   : > { %s1793_s25 = scalar_lea.vmem %s2028_s28, 256  ;;  %p1801_p12 = scmp.lt.s32.totalorder %s2028_s28, %s2028_s28 }
  0x33   : > { %p1794_p5 = scmp.ne.s32.totalorder %s2028_s28, %s1793_s25  ;;  %p1802_p0 = scmp.lt.s32.totalorder %s1793_s25, %s1793_s25 }
  0x35   : > { %p1796_p7 = pnand %p1794_p5, %p1754_p13  ;;  %p1803_p2 = por %p1802_p0, %p1801_p12 }
  0x37   : > { %p1797_p9 = pneg %p1796_p7 }
  0x39   : > { %p1804_p1 = pnand %p1803_p2, %p1797_p9 }
  0x3b   : > { %1807 = shalt.err (!%p1804_p1)
}
  0x3c   : > { %1633 = dma.hbm_to_vmem [thread:$0]  (!%p2024_p11), %s2382_s2, 256, %s2028_s28, [#allocation8], %s1912_s11, %s1912_s11, %s1913_s12  }
  0x3d   : > { %s2083_s9 = sadd.s32 1, %s1908_s18   ;;  %s28_s26 = sadd.s32 1, %s1904_s17 }
  0x3e   : > { %s25_s10 = ssub.s32 %s1908_s18, %s2083_s9  ;;  %p35_p13 = scmp.ne.s32.totalorder %s1904_s17, %s1900_s16 }
  0x3f   : > { %p26_p6 = scmp.eq.s32.totalorder %s25_s10, 0  ;;  %p36_p10 = scmp.eq.s32.totalorder %s1908_s18, 0 }
  0x40   : > { %p2392_p3 = scmp.eq.s32.totalorder %s1994_s19, 1  ;;  %p1644_p7 = scmp.lt.s32.totalorder %s1908_s18, 2 }
  0x41   : > { %s2099_s14 = scalar_select %p26_p6, %s1904_s17, %s28_s26  }
  0x42   : > { %p2093_p5 = por %p2392_p3, %p35_p13  ;;  %p37_p9 = por %p36_p10, %p35_p13 }
  0x43   : > { %s183_s20 = sand.u32 1, %s1904_s17   ;;  %s1432_s28 = sshll.u32 %s1908_s18, 6 }
  0x44   : > { %s2393_s13 = scalar_select %p2093_p5, 1, 0 }
  0x45   : > { %s1431_s24 = sshll.u32 %s183_s20, 2  ;;  %s2106_s27 = scalar_lea.hbm %s2380_s0, %s1432_s28 }
  0x46   : > { %s187_s29 = scalar_lea.vmem [#allocation4], %s1431_s24  ;;  %p2110_p11 = pnand %p1644_p7, %p37_p9 }
  0x47   : > { %s194_s30 = sshll.u32 %s187_s29, 4  ;;  %s184_s6 = scalar_lea.sflag [#allocation5], %s183_s20  ;;  %s2108_s30 = int_to_ptr.vmem [resolvable:$true] %s194_s30 }
  0x48   : > { %s1808_s25 = scalar_lea.hbm %s2106_s27, 64  ;;  %p1810_p0 = pneg %p2110_p11 }
  0x49   : > { %p1809_p12 = scmp.ne.s32.totalorder %s2106_s27, %s1808_s25  ;;  %s1813_s26 = scalar_lea.hbm %s2380_s0, 128 }
  0x4a   : > { %p1814_p13 = scmp.lt.u32.totalorder %s2106_s27, %s2380_s0  ;;  %p1815_p6 = scmp.lt.u32.totalorder %s1813_s26, %s1808_s25 }
  0x4b   : > { %p1811_p2 = pnand %p1810_p0, %p1809_p12  ;;  %p1817_p3 = scmp.lt.u32.totalorder %s1808_s25, %s2106_s27 }
  0x4c   : > { %p1816_p10 = por %p1815_p6, %p1814_p13 }
  0x4d   : > { %p1812_p1 = pneg %p1811_p2 }
  0x4e   : > { %p1818_p7 = por %p1817_p3, %p1816_p10 }
  0x50   : > { %p1819_p9 = pnand %p1818_p7, %p1812_p1 }
  0x52   : > { %1822 = shalt.err (!%p1819_p9)
}
  0x53   : > { %s1823_s20 = scalar_lea.vmem %s2108_s30, 64  ;;  %s1914_s28 = smov [#allocation4]  }
  0x54   : > { %p1824_p12 = scmp.ne.s32.totalorder %s2108_s30, %s1823_s20  ;;  %s1828_s11 = sshll.u32 %s1914_s28, 4  ;;  %s1829_s11 = int_to_ptr.vmem [resolvable:$false] %s1828_s11 }
  0x55   : > { %s1830_s12 = scalar_lea.vmem %s1829_s11, 128  ;;  %p1831_p4 = scmp.lt.s32.totalorder %s2108_s30, %s1829_s11 }
  0x56   : > { %p1826_p2 = pnand %p1824_p12, %p1810_p0  ;;  %p1832_p13 = scmp.lt.s32.totalorder %s1830_s12, %s1823_s20 }
  0x58   : > { %p1827_p5 = pneg %p1826_p2  ;;  %p1833_p6 = por %p1832_p13, %p1831_p4 }
  0x5a   : > { %p1834_p10 = pnand %p1833_p6, %p1827_p5 }
  0x5c   : > { %1837 = shalt.err (!%p1834_p10)
}
  0x5d   : > { %1637 = dma.hbm_to_vmem [thread:$0]  (!%p2110_p11), %s2106_s27, 64, %s2108_s30, %s184_s6  }
  0x5e   : > { %203 = sbr.rel (%p2013_p8) target bundleno = 1663 (0x67f), region = 36  ;;  %s2142_s29 = sand.u32 (!%p2013_p8), 1, %s1900_s16  }
  0x5f   : > { %s1434_s25 = sshll.u32 (!%p2013_p8), %s2142_s29, 2  ;;  %s206_s7 = scalar_lea.sflag (!%p2013_p8), [#allocation5], %s2142_s29 }
  0x60   : > { %s209_s8 = scalar_lea.vmem (!%p2013_p8), [#allocation4], %s1434_s25  ;;  %p2395_p4 = scmp.ne.s32.totalorder (!%p2013_p8), %s2388_s21, 0 }
  0x65   : > { %1883 = dma.done.wait (%p2395_p4), %s206_s7, 64  }
  0x66   : > { %1885 = vsyncadd (%p2395_p4), %s206_s7, 4294967232  ;;  %p2396_p5 = scmp.eq.s32.totalorder %s1994_s19, 0 }
  0x68   : > { %1887 = dma.done.wait (%p2396_p5), [#allocation8], 512   ;;  %p2397_p11 = pmov %p2396_p5 }
  0x69   : > { %v1915_v0 = vmov 0.0   ;;  %vm1916_vm0 = vmmov 0   ;;  %v1716_v1 = vld [vmem:[#allocation7] sm:$0xff]   ;;  %v1717_v2 = vld [vmem:[#allocation7 + $0x8] sm:$0xff]   ;;  %v243_v3 = vld [vmem:[%s209_s8] sm:$0xf] }
  0x6a   : > { %1889 = vsyncadd (%p2397_p11), [#allocation8], 4294966784  ;;  %1503 = vmatprep.subr.bf16.mxu0 %v1915_v0  ;;  %1507 = vmatprep.mubr.msk.bf16.mxu0 %vm1916_vm0, %v1915_v0  ;;  %vm260_vm1 = vcmask 261120   ;;  %vm304_vm2 = vcmask 785408   ;;  %s1917_s21 = smov 124   ;;  %s1918_s23 = smov 96  }
  0x6b   : > { %1511 = vmatprep.subr.bf16.mxu1 %v1915_v0  ;;  %1513 = vmatprep.mubr.msk.bf16.mxu1 %vm1916_vm0, %v1915_v0  ;;  %s1919_s27 = smov 88   ;;  %s1920_s30 = smov 92   ;;  %vm311_vm3 = vcmask 31744   ;;  %vm358_vm4 = vcmask 64512   ;;  %vm376_vm5 = vcmask 1043456   ;;  %vm538_vm6 = vcmask 64544  }
  0x6c   : > { %1504 = vmatpush3.bf16.msra.mxu0 %v1716_v1  ;;  %s1921_s5 = smov 84   ;;  %s1922_s6 = smov 120   ;;  %vm657_vm7 = vcmask 97344   ;;  %vm776_vm8 = vcmask 130144   ;;  %vm895_vm9 = vcmask 162944   ;;  %vm1014_vm10 = vcmask 195744  }
  0x6d   : > { %1505 = vmatprep.subr.bf16.mxu0 %v1915_v0  ;;  %s1923_s26 = smov 80   ;;  %s1924_s10 = smov 116   ;;  %vm1133_vm11 = vcmask 228544   ;;  %vm1252_vm12 = vcmask 261344  }
  0x6e   : > { %s1925_s24 = smov 76   ;;  %s1926_s20 = smov 112  }
  0x6f   : > { %s1927_s28 = smov 72   ;;  %s1928_s11 = smov 108  }
  0x70   : > { %1506 = vmatpush3.bf16.msra.mxu0 %v1717_v2  ;;  %s1929_s12 = smov 68   ;;  %s1930_s25 = smov 104  }
  0x71   : > { %1517 = vmatprep.subr.bf16.mxu0 %v1915_v0  ;;  %s1931_s7 = smov 100   ;;  %s1932_s8 = smov 60  }
  0x72   : > { %p2398_p0 = scmp.ne.s32.totalorder %s2393_s13, 0 }
  0x73   : > { %1508 = vmatmul.mubr.msk.bf16.vlgmr.msra.gmra.mrb[0].mxu0 %vm260_vm1, %v243_v3 }
  0x74   : > { %1519 = vmatprep.mubr.msk.bf16.mxu0 %vm1916_vm0, %v1915_v0 }
 0x146   : > { %v298_v4 = vpop.f32.mrb[0].mxu0 }
 0x147   : > { %305 = vst.msk [vmem:[#allocation2] sm:$0xff] %vm304_vm2, %v298_v4  ;;  %v1509_v5 = vpop.f32.mrb[1].mxu0 }
 0x148   : > { %v301_v6 = vpop.f32.mrb[2].mxu0 }
 0x149   : > { %v1510_v7 = vpop.f32.mrb[3].mxu0 }
 0x14e   : > { %v421_v8 = vld [vmem:[#allocation2] sm:$0xff] }
 0x14f   : > { %v2165_v9 = vpack.c.bf16 %v421_v8, %v421_v8 }
 0x151   : > { %424 = vrot.lane.b32.xlu1 %v2165_v9, %s1917_s21  ;;  %309 = vrot.lane.b32.xlu0 %v2165_v9, %s1918_s23  ;;  %s1933_s21 = smov 64   ;;  %s1934_s23 = smov 56  }
 0x155   : > { %545 = vrot.lane.b32.xlu1 %v2165_v9, %s1919_s27  ;;  %426 = vrot.lane.b32.xlu0 %v2165_v9, %s1920_s30  ;;  %s1935_s27 = smov 52   ;;  %s1936_s30 = smov 44  }
 0x159   : > { %664 = vrot.lane.b32.xlu1 %v2165_v9, %s1921_s5  ;;  %543 = vrot.lane.b32.xlu0 %v2165_v9, %s1922_s6  ;;  %s1937_s5 = smov 40   ;;  %s1938_s6 = smov 36  }
 0x15d   : > { %783 = vrot.lane.b32.xlu1 %v2165_v9, %s1923_s26  ;;  %662 = vrot.lane.b32.xlu0 %v2165_v9, %s1924_s10  ;;  %s1939_s26 = smov 48   ;;  %s1940_s10 = smov 4  }
 0x161   : > { %902 = vrot.lane.b32.xlu1 %v2165_v9, %s1925_s24  ;;  %781 = vrot.lane.b32.xlu0 %v2165_v9, %s1926_s20  ;;  %s1941_s24 = smov 8   ;;  %s1942_s20 = smov 12  }
 0x165   : > { %1021 = vrot.lane.b32.xlu1 %v2165_v9, %s1927_s28  ;;  %900 = vrot.lane.b32.xlu0 %v2165_v9, %s1928_s11  ;;  %s1943_s28 = smov 16   ;;  %s1944_s11 = smov 20  }
 0x169   : > { %1140 = vrot.lane.b32.xlu1 %v2165_v9, %s1929_s12  ;;  %1019 = vrot.lane.b32.xlu0 %v2165_v9, %s1930_s25  ;;  %s1945_s12 = smov 24   ;;  %s1946_s25 = smov 28  }
 0x16d   : > { %1138 = vrot.lane.b32.xlu0 %v2165_v9, %s1931_s7  ;;  %s1437_s7 = sshll.u32 %s2142_s29, 3 }
 0x1c3   : > { %v310_v10 = vpop.permute.xlu0 %309  ;;  %v425_v13 = vpop.permute.xlu1 %424 }
 0x1c4   : > { %v316_v11 = vsel %vm311_vm3, %v310_v10, 0 }
 0x1c5   : > { %1512 = vmatpush3.bf16.xpose.msra.mxu1 %v316_v11 }
 0x1c6   : > { %1523 = vmatprep.subr.bf16.mxu1 %v1915_v0 }
 0x1c7   : > { %v427_v12 = vpop.permute.xlu0 %426  ;;  %v546_v15 = vpop.permute.xlu1 %545 }
 0x1c8   : > { %v432_v14 = vsel %vm311_vm3, %v427_v12, 0  ;;  %v551_v16 = vsel %vm311_vm3, %v546_v15, 0 }
 0x1cb   : > { %v665_v17 = vpop.permute.xlu1 %664  ;;  %v544_v18 = vpop.permute.xlu0 %543 }
 0x1cc   : > { %1514 = vmatmul.mubr.msk.bf16.vlgmr.msra.gmra.mrb[0].mxu1 %vm311_vm3, %v2165_v9  ;;  %v670_v19 = vsel %vm311_vm3, %v665_v17, 0 }
 0x1cd   : > { %1524 = vmatpush3.bf16.xpose.msra.mxu1 %v432_v14  ;;  %1525 = vmatprep.mubr.msk.bf16.mxu1 %vm1916_vm0, %v1915_v0 }
 0x1ce   : > { %1535 = vmatprep.subr.bf16.mxu1 %v1915_v0 }
 0x1cf   : > { %v784_v20 = vpop.permute.xlu1 %783  ;;  %v663_v21 = vpop.permute.xlu0 %662 }
 0x1d0   : > { %v789_v22 = vsel %vm311_vm3, %v784_v20, 0 }
 0x1d3   : > { %v903_v23 = vpop.permute.xlu1 %902  ;;  %v782_v24 = vpop.permute.xlu0 %781 }
 0x1d4   : > { %1526 = vmatmul.mubr.msk.bf16.vlgmr.msra.gmra.mrb[4].mxu1 %vm311_vm3, %v425_v13  ;;  %v908_v25 = vsel %vm311_vm3, %v903_v23, 0 }
 0x1d5   : > { %1536 = vmatpush3.bf16.xpose.msra.mxu1 %v551_v16  ;;  %1537 = vmatprep.mubr.msk.bf16.mxu1 %vm1916_vm0, %v1915_v0 }
 0x1d6   : > { %1547 = vmatprep.subr.bf16.mxu1 %v1915_v0 }
 0x1d7   : > { %v1022_v26 = vpop.permute.xlu1 %1021  ;;  %v901_v27 = vpop.permute.xlu0 %900 }
 0x1d8   : > { %v1027_v28 = vsel %vm311_vm3, %v1022_v26, 0 }
 0x1db   : > { %v1141_v29 = vpop.permute.xlu1 %1140  ;;  %v1020_v30 = vpop.permute.xlu0 %1019 }
 0x1dc   : > { %1538 = vmatmul.mubr.msk.bf16.vlgmr.msra.gmra.mrb[8].mxu1 %vm311_vm3, %v544_v18  ;;  %v1146_v31 = vsel %vm311_vm3, %v1141_v29, 0 }
 0x1dd   : > { %1548 = vmatpush3.bf16.xpose.msra.mxu1 %v670_v19  ;;  %1549 = vmatprep.mubr.msk.bf16.mxu1 %vm1916_vm0, %v1915_v0 }
 0x1de   : > { %1559 = vmatprep.subr.bf16.mxu1 %v1915_v0 }
 0x1df   : > { %v1139_v32 = vpop.permute.xlu0 %1138 }
 0x1e4   : > { %1550 = vmatmul.mubr.msk.bf16.vlgmr.msra.gmra.mrb[12].mxu1 %vm311_vm3, %v663_v21 }
 0x1e5   : > { %1560 = vmatpush3.bf16.xpose.msra.mxu1 %v789_v22  ;;  %1561 = vmatprep.mubr.msk.bf16.mxu1 %vm1916_vm0, %v1915_v0 }
 0x1e6   : > { %1571 = vmatprep.subr.bf16.mxu1 %v1915_v0 }
 0x1ec   : > { %1562 = vmatmul.mubr.msk.bf16.vlgmr.msra.gmra.mrb[16].mxu1 %vm311_vm3, %v782_v24 }
 0x1ed   : > { %1572 = vmatpush3.bf16.xpose.msra.mxu1 %v908_v25  ;;  %1573 = vmatprep.mubr.msk.bf16.mxu1 %vm1916_vm0, %v1915_v0 }
 0x1ee   : > { %1583 = vmatprep.subr.bf16.mxu1 %v1915_v0 }
 0x1f4   : > { %1574 = vmatmul.mubr.msk.bf16.vlgmr.msra.gmra.mrb[20].mxu1 %vm311_vm3, %v901_v27 }
 0x1f5   : > { %1584 = vmatpush3.bf16.xpose.msra.mxu1 %v1027_v28  ;;  %1585 = vmatprep.mubr.msk.bf16.mxu1 %vm1916_vm0, %v1915_v0 }
 0x1f6   : > { %1595 = vmatprep.subr.bf16.mxu1 %v1915_v0 }
 0x1fc   : > { %1586 = vmatmul.mubr.msk.bf16.vlgmr.msra.gmra.mrb[24].mxu1 %vm311_vm3, %v1020_v30 }
 0x1fd   : > { %1596 = vmatpush3.bf16.xpose.msra.mxu1 %v1146_v31  ;;  %1597 = vmatprep.mubr.msk.bf16.mxu1 %vm1916_vm0, %v1915_v0 }
 0x1fe   : > { %1607 = vmatprep.subr.bf16.mxu1 %v1915_v0 }
 0x204   : > { %1598 = vmatmul.mubr.msk.bf16.vlgmr.msra.gmra.mrb[28].mxu1 %vm311_vm3, %v1139_v32 }
 0x205   : > { %1611 = vmatprep.mubr.msk.bf16.mxu1 %vm1916_vm0, %v1915_v0 }
 0x29f   : > { %v352_v33 = vpop.f32.mrb[0].mxu1 }
 0x2a0   : > { %v1515_v34 = vpop.f32.mrb[1].mxu1  ;;  %v359_v35 = vsel %vm358_vm4, %v352_v33, -inf }
 0x2a1   : > { %360 = vmax.xlane.f32.xlu1 %v359_v35  ;;  %v355_v36 = vpop.f32.mrb[2].mxu1 }
 0x2a2   : > { %v1516_v37 = vpop.f32.mrb[3].mxu1 }
 0x2a7   : > { %v468_v38 = vpop.f32.mrb[4].mxu1 }
 0x2a8   : > { %v1527_v39 = vpop.f32.mrb[5].mxu1  ;;  %v474_v40 = vsel %vm358_vm4, %v468_v38, -inf }
 0x2a9   : > { %475 = vmax.xlane.f32.xlu0 %v474_v40  ;;  %v471_v41 = vpop.f32.mrb[6].mxu1 }
 0x2aa   : > { %v1528_v42 = vpop.f32.mrb[7].mxu1 }
 0x2af   : > { %v587_v43 = vpop.f32.mrb[8].mxu1 }
 0x2b0   : > { %v1539_v44 = vpop.f32.mrb[9].mxu1  ;;  %v593_v45 = vsel %vm358_vm4, %v587_v43, -inf }
 0x2b1   : > { %594 = vmax.xlane.f32.xlu0 %v593_v45  ;;  %v590_v46 = vpop.f32.mrb[10].mxu1 }
 0x2b2   : > { %v1540_v47 = vpop.f32.mrb[11].mxu1 }
 0x2b7   : > { %v706_v48 = vpop.f32.mrb[12].mxu1 }
 0x2b8   : > { %v1551_v49 = vpop.f32.mrb[13].mxu1  ;;  %v712_v50 = vsel %vm358_vm4, %v706_v48, -inf }
 0x2b9   : > { %713 = vmax.xlane.f32.xlu1 %v712_v50  ;;  %v709_v51 = vpop.f32.mrb[14].mxu1 }
 0x2ba   : > { %v1552_v52 = vpop.f32.mrb[15].mxu1 }
 0x2bf   : > { %v825_v53 = vpop.f32.mrb[16].mxu1 }
 0x2c0   : > { %v1563_v54 = vpop.f32.mrb[17].mxu1  ;;  %v831_v55 = vsel %vm358_vm4, %v825_v53, -inf }
 0x2c1   : > { %832 = vmax.xlane.f32.xlu0 %v831_v55  ;;  %v828_v56 = vpop.f32.mrb[18].mxu1 }
 0x2c2   : > { %v1564_v57 = vpop.f32.mrb[19].mxu1 }
 0x2c7   : > { %v2228_v58 = vpop.f32.mrb[20].mxu1 }
 0x2c8   : > { %v1575_v59 = vpop.f32.mrb[21].mxu1  ;;  %v950_v60 = vsel %vm358_vm4, %v2228_v58, -inf }
 0x2c9   : > { %951 = vmax.xlane.f32.xlu1 %v950_v60  ;;  %v947_v61 = vpop.f32.mrb[22].mxu1 }
 0x2ca   : > { %v1576_v62 = vpop.f32.mrb[23].mxu1 }
 0x2cf   : > { %v1063_v63 = vpop.f32.mrb[24].mxu1 }
 0x2d0   : > { %v1587_v1 = vpop.f32.mrb[25].mxu1  ;;  %v1069_v2 = vsel %vm358_vm4, %v1063_v63, -inf }
 0x2d1   : > { %1070 = vmax.xlane.f32.xlu0 %v1069_v2  ;;  %v1066_v3 = vpop.f32.mrb[26].mxu1 }
 0x2d2   : > { %v1588_v4 = vpop.f32.mrb[27].mxu1 }
 0x2d7   : > { %v2233_v5 = vpop.f32.mrb[28].mxu1 }
 0x2d8   : > { %v1599_v6 = vpop.f32.mrb[29].mxu1  ;;  %v1188_v10 = vsel %vm358_vm4, %v2233_v5, -inf }
 0x2d9   : > { %v1185_v7 = vpop.f32.mrb[30].mxu1 }
 0x2da   : > { %486 = vrot.lane.b32.xlu1 %v2165_v9, %s1932_s8  ;;  %v1600_v8 = vpop.f32.mrb[31].mxu1 }
 0x2e7   : > { %371 = vrot.lane.b32.xlu0 %v2165_v9, %s1933_s21 }
 0x2fe   : > { %1189 = vmax.xlane.f32.xlu1 %v1188_v10 }
 0x30f   : > { %605 = vrot.lane.b32.xlu1 %v2165_v9, %s1934_s23  ;;  %s1462_s23 = sshll.u32 %s1994_s19, 7  ;;  %s1324_s19 = scalar_lea.sflag [#allocation6], %s2142_s29 }
 0x32e   : > { %v361_v11 = vpop.xlane.xlu1 %360 }
 0x32f   : > { %v362_v12 = vsub.f32 %v352_v33, %v361_v11 }
 0x331   : > { %v363_v13 = vmul.f32 1.442695, %v362_v12 }
 0x333   : > { %1720 = vpow2.f32 %v363_v13 }
 0x336   : > { %v476_v14 = vpop.xlane.xlu0 %475 }
 0x337   : > { %v477_v15 = vsub.f32 %v468_v38, %v476_v14 }
 0x339   : > { %v478_v16 = vmul.f32 1.442695, %v477_v15 }
 0x33b   : > { %1722 = vpow2.f32 %v478_v16 }
 0x33d   : > { %v2240_v17 = vpop.eup %1720 }
 0x33e   : > { %v595_v18 = vpop.xlane.xlu0 %594  ;;  %v365_v19 = vsel %vm358_vm4, %v2240_v17, 0.0 }
 0x33f   : > { %v596_v20 = vsub.f32 %v587_v43, %v595_v18  ;;  %366 = vadd.xlane.f32.xlu0 %v365_v19 }
 0x341   : > { %v597_v21 = vmul.f32 1.442695, %v596_v20 }
 0x343   : > { %1724 = vpow2.f32 %v597_v21 }
 0x345   : > { %v2244_v22 = vpop.eup %1722 }
 0x346   : > { %v714_v23 = vpop.xlane.xlu1 %713  ;;  %v480_v24 = vsel %vm358_vm4, %v2244_v22, 0.0 }
 0x347   : > { %v715_v25 = vsub.f32 %v706_v48, %v714_v23  ;;  %481 = vadd.xlane.f32.xlu1 %v480_v24 }
 0x349   : > { %v716_v26 = vmul.f32 1.442695, %v715_v25 }
 0x34b   : > { %1726 = vpow2.f32 %v716_v26 }
 0x34d   : > { %v2248_v27 = vpop.eup %1724 }
 0x34e   : > { %v833_v28 = vpop.xlane.xlu0 %832  ;;  %v599_v29 = vsel %vm358_vm4, %v2248_v27, 0.0 }
 0x34f   : > { %v834_v30 = vsub.f32 %v825_v53, %v833_v28  ;;  %600 = vadd.xlane.f32.xlu0 %v599_v29 }
 0x351   : > { %v835_v31 = vmul.f32 1.442695, %v834_v30 }
 0x353   : > { %1728 = vpow2.f32 %v835_v31 }
 0x355   : > { %v2252_v32 = vpop.eup %1726 }
 0x356   : > { %v718_v33 = vsel %vm358_vm4, %v2252_v32, 0.0  ;;  %v952_v41 = vpop.xlane.xlu1 %951 }
 0x357   : > { %719 = vadd.xlane.f32.xlu1 %v718_v33  ;;  %v953_v43 = vsub.f32 %v2228_v58, %v952_v41 }
 0x359   : > { %v954_v45 = vmul.f32 1.442695, %v953_v43 }
 0x35a   : > { %v487_v48 = vpop.permute.xlu1 %486 }
 0x35b   : > { %v492_v60 = vsel %vm376_vm5, %v487_v48, 0 }
 0x35d   : > { %v2256_v34 = vpop.eup %1728 }
 0x35e   : > { %v1071_v35 = vpop.xlane.xlu0 %1070  ;;  %v837_v36 = vsel %vm358_vm4, %v2256_v34, 0.0 }
 0x35f   : > { %v1072_v37 = vsub.f32 %v1063_v63, %v1071_v35  ;;  %838 = vadd.xlane.f32.xlu1 %v837_v36 }
 0x361   : > { %v1073_v38 = vmul.f32 1.442695, %v1072_v37 }
 0x362   : > { %v372_v39 = vpop.permute.xlu0 %371 }
 0x363   : > { %1730 = vpow2.f32 %v1073_v38  ;;  %v378_v40 = vsel %vm376_vm5, %v372_v39, 0 }
 0x364   : > { %1518 = vmatpush3.bf16.msra.mxu0 %v378_v40  ;;  %1732 = vpow2.f32 %v954_v45 }
 0x365   : > { %724 = vrot.lane.b32.xlu0 %v2165_v9, %s1935_s27  ;;  %1529 = vmatprep.subr.bf16.mxu0 %v1915_v0  ;;  %s241_s27 = scalar_lea.vmem [#allocation10], %s1437_s7 }
 0x36d   : > { %v2263_v42 = vpop.eup %1730 }
 0x36e   : > { %v1075_v44 = vsel %vm358_vm4, %v2263_v42, 0.0  ;;  %v2268_v46 = vpop.eup %1732 }
 0x36f   : > { %1076 = vadd.xlane.f32.xlu1 %v1075_v44  ;;  %v956_v47 = vsel %vm358_vm4, %v2268_v46, 0.0 }
 0x384   : > { %957 = vadd.xlane.f32.xlu0 %v956_v47 }
 0x38b   : > { %v1190_v49 = vpop.xlane.xlu1 %1189 }
 0x38c   : > { %v1191_v50 = vsub.f32 %v2233_v5, %v1190_v49 }
 0x38e   : > { %v1192_v51 = vmul.f32 1.442695, %v1191_v50 }
 0x38f   : > { %v606_v55 = vpop.permute.xlu1 %605 }
 0x390   : > { %1734 = vpow2.f32 %v1192_v51  ;;  %v611_v1 = vsel %vm376_vm5, %v606_v55, 0 }
 0x39a   : > { %v2273_v52 = vpop.eup %1734  ;;  %962 = vrot.lane.b32.xlu0 %v2165_v9, %s1936_s30  ;;  %s1337_s30 = sshll.u32 %s241_s27, 4  ;;  %s2337_s30 = int_to_ptr.vmem [resolvable:$true] %s1337_s30 }
 0x39b   : > { %v1194_v53 = vsel %vm358_vm4, %v2273_v52, 0.0 }
 0x39c   : > { %1195 = vadd.xlane.f32.xlu1 %v1194_v53 }
 0x39e   : > { %1081 = vrot.lane.b32.xlu0 %v2165_v9, %s1937_s5 }
 0x3a2   : > { %1200 = vrot.lane.b32.xlu0 %v2165_v9, %s1938_s6 }
 0x3ad   : > { %843 = vrot.lane.b32.xlu1 %v2165_v9, %s1939_s26  ;;  %s2335_s26 = scalar_lea.hbm %s2384_s4, %s1462_s23 }
 0x3cc   : > { %v367_v54 = vpop.xlane.xlu0 %366 }
 0x3cd   : > { %1736 = vrcp.f32 %v367_v54 }
 0x3d4   : > { %v482_v56 = vpop.xlane.xlu1 %481 }
 0x3d5   : > { %1738 = vrcp.f32 %v482_v56 }
 0x3d7   : > { %v1737_v57 = vpop.eup %1736 }
 0x3d8   : > { %v369_v58 = vmul.f32 %v1737_v57, %v2240_v17 }
 0x3da   : > { %v370_v59 = vpack.c.bf16 %v369_v58, %v369_v58 }
 0x3dc   : > { %1520 = vmatmul.mubr.msk.bf16.vlgmr.msra.gmra.mrb[4].mxu0 %vm358_vm4, %v370_v59  ;;  %v601_v61 = vpop.xlane.xlu0 %600 }
 0x3dd   : > { %1530 = vmatpush3.bf16.msra.mxu0 %v492_v60  ;;  %1740 = vrcp.f32 %v601_v61  ;;  %1531 = vmatprep.mubr.msk.bf16.mxu0 %vm1916_vm0, %v1915_v0  ;;  %v1718_v60 = vld [vmem:[#allocation9] sm:$0xff]   ;;  %v1719_v61 = vld [vmem:[#allocation9 + $0x8] sm:$0xff]  }
 0x3de   : > { %1541 = vmatprep.subr.bf16.mxu0 %v1915_v0  ;;  %1608 = vmatpush3.bf16.msra.mxu1 %v1718_v60 }
 0x3df   : > { %v1739_v9 = vpop.eup %1738  ;;  %1609 = vmatprep.subr.bf16.mxu1 %v1915_v0 }
 0x3e0   : > { %v484_v62 = vmul.f32 %v1739_v9, %v2244_v22  ;;  %v725_v5 = vpop.permute.xlu0 %724 }
 0x3e1   : > { %v730_v7 = vsel %vm376_vm5, %v725_v5, 0 }
 0x3e2   : > { %v485_v63 = vpack.c.bf16 %v484_v62, %v484_v62  ;;  %1610 = vmatpush3.bf16.msra.mxu1 %v1719_v61 }
 0x3e4   : > { %v720_v2 = vpop.xlane.xlu1 %719  ;;  %1532 = vmatmul.mubr.msk.bf16.vlgmr.msra.gmra.mrb[8].mxu0 %vm358_vm4, %v485_v63 }
 0x3e5   : > { %1742 = vrcp.f32 %v720_v2  ;;  %1542 = vmatpush3.bf16.msra.mxu0 %v611_v1  ;;  %1543 = vmatprep.mubr.msk.bf16.mxu0 %vm1916_vm0, %v1915_v0 }
 0x3e6   : > { %1553 = vmatprep.subr.bf16.mxu0 %v1915_v0 }
 0x3e7   : > { %v1741_v3 = vpop.eup %1740 }
 0x3e8   : > { %v603_v4 = vmul.f32 %v1741_v3, %v2248_v27 }
 0x3ea   : > { %v604_v6 = vpack.c.bf16 %v603_v4, %v603_v4 }
 0x3ec   : > { %1544 = vmatmul.mubr.msk.bf16.vlgmr.msra.gmra.mrb[12].mxu0 %vm358_vm4, %v604_v6  ;;  %v839_v12 = vpop.xlane.xlu1 %838 }
 0x3ed   : > { %1554 = vmatpush3.bf16.msra.mxu0 %v730_v7  ;;  %1555 = vmatprep.mubr.msk.bf16.mxu0 %vm1916_vm0, %v1915_v0  ;;  %1744 = vrcp.f32 %v839_v12 }
 0x3ee   : > { %1565 = vmatprep.subr.bf16.mxu0 %v1915_v0 }
 0x3ef   : > { %v1743_v8 = vpop.eup %1742 }
 0x3f0   : > { %v722_v10 = vmul.f32 %v1743_v8, %v2252_v32 }
 0x3f2   : > { %v723_v11 = vpack.c.bf16 %v722_v10, %v722_v10 }
 0x3f4   : > { %1556 = vmatmul.mubr.msk.bf16.vlgmr.msra.gmra.mrb[16].mxu0 %vm358_vm4, %v723_v11 }
 0x3f5   : > { %1567 = vmatprep.mubr.msk.bf16.mxu0 %vm1916_vm0, %v1915_v0 }
 0x3f7   : > { %v1745_v15 = vpop.eup %1744 }
 0x3f8   : > { %v841_v17 = vmul.f32 %v1745_v15, %v2256_v34  ;;  %v1457_v15 = vld [vmem:[%s2383_s3] ss:$0 sm:$0xff] }
 0x3fa   : > { %v842_v21 = vpack.c.bf16 %v841_v17, %v841_v17 }
 0x3fc   : > { %v1077_v14 = vpop.xlane.xlu1 %1076 }
 0x411   : > { %v958_v13 = vpop.xlane.xlu0 %957 }
 0x412   : > { %1746 = vrcp.f32 %v958_v13 }
 0x413   : > { %1748 = vrcp.f32 %v1077_v14 }
 0x415   : > { %v963_v20 = vpop.permute.xlu0 %962 }
 0x416   : > { %v968_v23 = vsel %vm376_vm5, %v963_v20, 0 }
 0x419   : > { %v1082_v25 = vpop.permute.xlu0 %1081 }
 0x41a   : > { %v1087_v28 = vsel %vm376_vm5, %v1082_v25, 0 }
 0x41c   : > { %v1747_v22 = vpop.eup %1746 }
 0x41d   : > { %v960_v24 = vmul.f32 %v1747_v22, %v2268_v46  ;;  %v1749_v27 = vpop.eup %1748  ;;  %v1201_v30 = vpop.permute.xlu0 %1200 }
 0x41e   : > { %v1079_v29 = vmul.f32 %v1749_v27, %v2263_v42  ;;  %v1206_v33 = vsel %vm376_vm5, %v1201_v30, 0 }
 0x41f   : > { %v961_v26 = vpack.c.bf16 %v960_v24, %v960_v24 }
 0x420   : > { %v1080_v31 = vpack.c.bf16 %v1079_v29, %v1079_v29 }
 0x429   : > { %v1196_v16 = vpop.xlane.xlu1 %1195 }
 0x42a   : > { %1750 = vrcp.f32 %v1196_v16 }
 0x42d   : > { %v844_v18 = vpop.permute.xlu1 %843 }
 0x42e   : > { %v849_v19 = vsel %vm376_vm5, %v844_v18, 0 }
 0x42f   : > { %1566 = vmatpush3.bf16.msra.mxu0 %v849_v19 }
 0x430   : > { %1577 = vmatprep.subr.bf16.mxu0 %v1915_v0 }
 0x432   : > { %1568 = vmatmul.mubr.msk.bf16.vlgmr.msra.gmra.mrb[20].mxu0 %vm358_vm4, %v842_v21 }
 0x433   : > { %1578 = vmatpush3.bf16.msra.mxu0 %v968_v23  ;;  %1579 = vmatprep.mubr.msk.bf16.mxu0 %vm1916_vm0, %v1915_v0 }
 0x434   : > { %1589 = vmatprep.subr.bf16.mxu0 %v1915_v0  ;;  %v1751_v32 = vpop.eup %1750 }
 0x435   : > { %v1198_v34 = vmul.f32 %v1751_v32, %v2273_v52 }
 0x437   : > { %v1199_v35 = vpack.c.bf16 %v1198_v34, %v1198_v34 }
 0x43a   : > { %1580 = vmatmul.mubr.msk.bf16.vlgmr.msra.gmra.mrb[24].mxu0 %vm358_vm4, %v961_v26 }
 0x43b   : > { %1590 = vmatpush3.bf16.msra.mxu0 %v1087_v28  ;;  %1591 = vmatprep.mubr.msk.bf16.mxu0 %vm1916_vm0, %v1915_v0 }
 0x43c   : > { %1601 = vmatprep.subr.bf16.mxu0 %v1915_v0 }
 0x442   : > { %1592 = vmatmul.mubr.msk.bf16.vlgmr.msra.gmra.mrb[28].mxu0 %vm358_vm4, %v1080_v31 }
 0x443   : > { %1602 = vmatpush3.bf16.msra.mxu0 %v1206_v33  ;;  %1603 = vmatprep.mubr.msk.bf16.mxu0 %vm1916_vm0, %v1915_v0 }
 0x44a   : > { %1604 = vmatmul.mubr.msk.bf16.vlgmr.msra.gmra.mrb[32].mxu0 %vm358_vm4, %v1199_v35 }
 0x4af   : > { %v414_v36 = vpop.f32.mrb[4].mxu0 }
 0x4b0   : > { %420 = vst.msk [vmem:[#allocation3] sm:$0xff] %vm311_vm3, %v414_v36  ;;  %v1521_v37 = vpop.f32.mrb[5].mxu0 }
 0x4b1   : > { %v417_v38 = vpop.f32.mrb[6].mxu0 }
 0x4b2   : > { %v1522_v39 = vpop.f32.mrb[7].mxu0 }
 0x4b7   : > { %v528_v40 = vpop.f32.mrb[8].mxu0 }
 0x4b8   : > { %535 = vrot.lane.b32.xlu1 %v528_v40, %s1940_s10  ;;  %v1533_v41 = vpop.f32.mrb[9].mxu0  ;;  %s1838_s10 = scalar_lea.vmem %s2337_s30, 128 }
 0x4b9   : > { %v531_v42 = vpop.f32.mrb[10].mxu0  ;;  %p1839_p8 = scmp.ne.s32.totalorder %s2337_s30, %s1838_s10 }
 0x4ba   : > { %v1534_v43 = vpop.f32.mrb[11].mxu0 }
 0x4bb   : > { %p1840_p1 = pnand %p1839_p8, %p2398_p0 }
 0x4bd   : > { %p1841_p3 = pneg %p1840_p1 }
 0x4bf   : > { %v647_v44 = vpop.f32.mrb[12].mxu0 }
 0x4c0   : > { %654 = vrot.lane.b32.xlu0 %v647_v44, %s1941_s24  ;;  %v1545_v45 = vpop.f32.mrb[13].mxu0  ;;  %s1947_s24 = smov [#allocation10]  }
 0x4c1   : > { %v650_v46 = vpop.f32.mrb[14].mxu0 }
 0x4c2   : > { %v1546_v47 = vpop.f32.mrb[15].mxu0 }
 0x4c7   : > { %v766_v48 = vpop.f32.mrb[16].mxu0 }
 0x4c8   : > { %773 = vrot.lane.b32.xlu1 %v766_v48, %s1942_s20  ;;  %v1557_v49 = vpop.f32.mrb[17].mxu0  ;;  %s1842_s20 = sshll.u32 %s1947_s24, 4  ;;  %s1843_s20 = int_to_ptr.vmem [resolvable:$false] %s1842_s20 }
 0x4c9   : > { %v769_v50 = vpop.f32.mrb[18].mxu0  ;;  %p1845_p7 = scmp.lt.s32.totalorder %s2337_s30, %s1843_s20 }
 0x4ca   : > { %v1558_v51 = vpop.f32.mrb[19].mxu0 }
 0x505   : > { %v885_v52 = vpop.f32.mrb[20].mxu0 }
 0x506   : > { %892 = vrot.lane.b32.xlu0 %v885_v52, %s1943_s28  ;;  %v1569_v53 = vpop.f32.mrb[21].mxu0  ;;  %s1844_s28 = scalar_lea.vmem %s1843_s20, 256 }
 0x507   : > { %v888_v54 = vpop.f32.mrb[22].mxu0  ;;  %p1846_p9 = scmp.lt.s32.totalorder %s1844_s28, %s1838_s10 }
 0x508   : > { %v1570_v55 = vpop.f32.mrb[23].mxu0 }
 0x509   : > { %p1847_p12 = por %p1846_p9, %p1845_p7 }
 0x50b   : > { %p1848_p2 = pnand %p1847_p12, %p1841_p3 }
 0x50d   : > { %v1004_v56 = vpop.f32.mrb[24].mxu0 }
 0x50e   : > { %1011 = vrot.lane.b32.xlu1 %v1004_v56, %s1944_s11  ;;  %v1581_v57 = vpop.f32.mrb[25].mxu0 }
 0x50f   : > { %v1007_v58 = vpop.f32.mrb[26].mxu0 }
 0x510   : > { %v1582_v59 = vpop.f32.mrb[27].mxu0 }
 0x515   : > { %v1123_v9 = vpop.f32.mrb[28].mxu0 }
 0x516   : > { %1130 = vrot.lane.b32.xlu0 %v1123_v9, %s1945_s12  ;;  %v1593_v62 = vpop.f32.mrb[29].mxu0 }
 0x517   : > { %v1126_v63 = vpop.f32.mrb[30].mxu0 }
 0x518   : > { %v1594_v1 = vpop.f32.mrb[31].mxu0 }
 0x51d   : > { %v1242_v2 = vpop.f32.mrb[32].mxu0 }
 0x51e   : > { %1249 = vrot.lane.b32.xlu1 %v1242_v2, %s1946_s25  ;;  %v1605_v3 = vpop.f32.mrb[33].mxu0 }
 0x51f   : > { %v1245_v4 = vpop.f32.mrb[34].mxu0 }
 0x520   : > { %v1606_v5 = vpop.f32.mrb[35].mxu0 }
 0x52a   : > { %v536_v6 = vpop.permute.xlu1 %535 }
 0x52b   : > { %539 = vst.msk [vmem:[#allocation3] sm:$0xff] %vm538_vm6, %v536_v6 }
 0x532   : > { %v655_v7 = vpop.permute.xlu0 %654 }
 0x533   : > { %658 = vst.msk [vmem:[#allocation3] sm:$0xff] %vm657_vm7, %v655_v7 }
 0x53a   : > { %v774_v0 = vpop.permute.xlu1 %773 }
 0x53b   : > { %777 = vst.msk [vmem:[#allocation3] sm:$0xff] %vm776_vm8, %v774_v0 }
 0x578   : > { %v893_v8 = vpop.permute.xlu0 %892 }
 0x579   : > { %896 = vst.msk [vmem:[#allocation3] sm:$0xff] %vm895_vm9, %v893_v8 }
 0x580   : > { %v1012_v10 = vpop.permute.xlu1 %1011 }
 0x581   : > { %1015 = vst.msk [vmem:[#allocation3] sm:$0xff] %vm1014_vm10, %v1012_v10 }
 0x588   : > { %v1131_v11 = vpop.permute.xlu0 %1130 }
 0x589   : > { %1134 = vst.msk [vmem:[#allocation3] sm:$0xff] %vm1133_vm11, %v1131_v11 }
 0x590   : > { %v1250_v12 = vpop.permute.xlu1 %1249 }
 0x591   : > { %1253 = vst.msk [vmem:[#allocation3] sm:$0xff] %vm1252_vm12, %v1250_v12 }
 0x598   : > { %v1254_v13 = vld [vmem:[#allocation3] sm:$0xff] }
 0x599   : > { %v1255_v14 = vpack.c.bf16 %v1254_v13, %v1254_v13 }
 0x59b   : > { %1612 = vmatmul.mubr.msk.bf16.vlgmr.msra.gmra.mrb[32].mxu1 %vm260_vm1, %v1255_v14 }
 0x66e   : > { %v1316_v16 = vpop.f32.mrb[32].mxu1 }
 0x66f   : > { %v1317_v17 = vadd.f32 %v1457_v15, %v1316_v16  ;;  %v1613_v18 = vpop.f32.mrb[33].mxu1 }
 0x670   : > { %v1319_v19 = vpop.f32.mrb[34].mxu1 }
 0x671   : > { %v1614_v20 = vpop.f32.mrb[35].mxu1  ;;  %1322 = vst.msk [vmem:[%s241_s27] sm:$0xff] %vm260_vm1, %v1317_v17 }
 0x672   : > { %1851 = shalt.err (!%p1848_p2)
}
 0x673   : > { %s1852_s29 = scalar_lea.hbm %s2335_s26, 128  ;;  %s1856_s25 = scalar_lea.hbm %s2384_s4, 256 }
 0x674   : > { %p1853_p13 = scmp.ne.s32.totalorder %s2335_s26, %s1852_s29  ;;  %p1857_p4 = scmp.lt.u32.totalorder %s2335_s26, %s2384_s4 }
 0x675   : > { %p1858_p5 = scmp.lt.u32.totalorder %s1856_s25, %s1852_s29  ;;  %p1860_p8 = scmp.lt.u32.totalorder %s1852_s29, %s2335_s26 }
 0x676   : > { %p1854_p6 = pnand %p1853_p13, %p2398_p0 }
 0x677   : > { %p1859_p11 = por %p1858_p5, %p1857_p4 }
 0x678   : > { %p1855_p10 = pneg %p1854_p6 }
 0x679   : > { %p1861_p1 = por %p1860_p8, %p1859_p11 }
 0x67b   : > { %p1862_p3 = pnand %p1861_p1, %p1855_p10 }
 0x67d   : > { %1865 = shalt.err (!%p1862_p3)
}
 0x67e   : > { %1625 = dma.vmem_to_hbm [thread:$0]  (%p2398_p0), %s2337_s30, 128, %s2335_s26, %s1324_s19  }
 0x67f PF: > { %s1349_s21 = sand.u32 1, %s1896_s15   ;;  %p2399_p7 = scmp.ne.s32.totalorder %s2389_s22, 0 }
 0x680   : > { %p2400_p9 = scmp.ge.s32.totalorder %s1908_s18, 2  ;;  %s1350_s23 = scalar_lea.sflag [#allocation6], %s1349_s21 }
 0x682   : > { %p1639_p12 = pnand %p2400_p9, %p2399_p7 }
 0x684   : > { %1891 = dma.done.wait (!%p1639_p12), %s1350_s23, 128  }
 0x685   : > { %1893 = vsyncadd (!%p1639_p12), %s1350_s23, 4294967168  ;;  %p18_p2 = scmp.ge.s32.totalorder %s2083_s9, 4   ;;  %s2401_s15 = smov %s1900_s16 }
 0x686   : > { %s2402_s16 = smov %s1904_s17  ;;  %s2403_s17 = smov %s2099_s14 }
 0x687   : > { %s2404_s18 = smov %s2083_s9  ;;  %20 = sbr.rel (!%p18_p2) target bundleno = 6 (0x6), region = 89 }
 0x68e   :  { %1355 = vsyncpa [#allocation5], 1 }
 0x68f   :  { %1357 = vsyncpa [#allocation5 + $0x1], 1 }
 0x690   :  { %1358 = vsyncpa [#allocation8], 1 }
 0x691   :  { %1359 = vsyncpa [#allocation6], 1 }
 0x692   :  { %1361 = vsyncpa [#allocation6 + $0x1], 1 }

</bundles_post_ra>
